<compile_context>
chip_gen: v5e
topology: v5e:2x2
jax: 0.10.0
libtpu: 0.0.40
codegen_flags: <defaults>
</compile_context>

<pallas_src>
import jax
import jax.numpy as jnp
from jax.experimental import pallas as pl
from jax.experimental.pallas import tpu as pltpu


def _fused_head_kernel(x_ref, w_ref, b_ref, o_ref):
    """One (cin, ts) NCHW activation slab x one anchor's fused (cin, no) weight.

    x_ref: (1, cin, ts)   feature-map slab, original (f32, NCHW) layout
    w_ref: (na, cin, no)  bf16  fused weights (ImplicitA/M folded), grid-resident
    b_ref: (na, 1, no)    f32   fused biases, grid-resident
    o_ref: (1, 1, ts, no)       output block in (bs, na, S, no) layout
    """
    a = pl.program_id(2)                        # anchor index (innermost grid axis)
    x = x_ref[0].astype(w_ref.dtype)            # (cin, ts): f32 -> bf16 on the VPU
    w = w_ref[a]                                # (cin, no): per-anchor weight slice
    # Contract over cin (dim 0 of both operands); the implied LHS transpose goes to
    # the XLU, MXU accumulates in f32.
    acc = jax.lax.dot_general(
        x, w, dimension_numbers=(((0,), (0,)), ((), ())),
        preferred_element_type=jnp.float32)     # (ts, no)
    o_ref[0, 0] = (acc + b_ref[a]).astype(o_ref.dtype)


def _pick_tile(S, ts_max, prefer_split):
    """Largest spatial tile <= ts_max that divides S exactly and satisfies the
    (·,128) lane constraint (multiple of 128, or S itself).  When `prefer_split`
    (bs == 1), prefer a tile giving >= 2 spatial iterations (v7x: 2 TensorCores)."""
    cands = []
    if S <= ts_max:
        cands.append(S)
    t = 128
    lim = min(ts_max, S)
    while t <= lim:
        if S % t == 0:
            cands.append(t)
        t += 128
    if not cands:
        return None
    if prefer_split:
        multi = [t for t in cands if S // t >= 2]
        if multi:
            return max(multi)
    return max(cands)


def ikeypoint_fused_layer(x_flat, w_fused, b_fused, *, ts_max=2048,
                          vmem_limit_bytes=32 * 1024 * 1024,
                          out_dtype=jnp.float32):
    """x_flat: (bs, cin, S) feature map in NCHW order (S = ny*nx, row-major in (y,x)).
    w_fused: (na, cin, no) bf16, b_fused: (na, 1, no) f32.
    Returns (bs, na, S, no) in out_dtype."""
    bs, cin, S = x_flat.shape
    na, _, no = w_fused.shape
    x_bytes = jnp.dtype(x_flat.dtype).itemsize
    w_bytes = jnp.dtype(w_fused.dtype).itemsize
    o_bytes = jnp.dtype(out_dtype).itemsize

    # VMEM budget: double-buffered x + out tiles, resident weights/bias, plus room
    # for the in-kernel bf16 copy/transposed operand; ~25% headroom under the cap.
    budget = (int(0.75 * vmem_limit_bytes)
              - 2 * na * cin * no * w_bytes - 2 * na * no * 4)
    per_row = 2 * (cin * x_bytes + no * o_bytes) + 2 * cin * w_bytes
    ts_cap = max(128, (budget // per_row) // 128 * 128) if budget > per_row * 128 else 128
    ts_max_eff = max(128, min(ts_max, ts_cap))

    ts = _pick_tile(S, ts_max_eff, prefer_split=(bs == 1))
    if ts is None:
        # Pathological S (no aligned divisor <= ts_max_eff): fall back to padding.
        # TODO(synk): replace with an in-kernel masked store on the ragged tail.
        ts = max(128, min(ts_max_eff, (S // 128) * 128))
        ts = (ts // 128) * 128
    s_pad = pl.cdiv(S, ts) * ts
    if s_pad != S:
        x_flat = jnp.pad(x_flat, ((0, 0), (0, 0), (0, s_pad - S)))
    grid = (bs, s_pad // ts, na)

    cost = pl.CostEstimate(
        flops=2 * bs * S * cin * na * no,
        transcendentals=0,
        bytes_accessed=(bs * S * cin * x_bytes + na * cin * no * w_bytes
                        + na * no * 4 + bs * na * S * no * o_bytes))

    out = pl.pallas_call(
        _fused_head_kernel,
        out_shape=jax.ShapeDtypeStruct((bs, na, s_pad, no), out_dtype),
        grid_spec=pltpu.PrefetchScalarGridSpec(
            num_scalar_prefetch=0,
            grid=grid,
            in_specs=[
                # NCHW activations: block index independent of the inner anchor
                # axis, so the slab stays resident in VMEM across anchors.
                pl.BlockSpec((1, cin, ts), lambda b, s, a: (b, 0, s)),
                # Fused per-anchor weight / bias: constant index map -> fetched
                # once and kept grid-resident (< ~1 MiB even at cin=1024).
                pl.BlockSpec((na, cin, no), lambda b, s, a: (0, 0, 0)),
                pl.BlockSpec((na, 1, no), lambda b, s, a: (0, 0, 0)),
            ],
            out_specs=pl.BlockSpec((1, 1, ts, no), lambda b, s, a: (b, a, s, 0)),
        ),
        compiler_params=pltpu.CompilerParams(
            dimension_semantics=("parallel", "parallel", "arbitrary"),
            vmem_limit_bytes=vmem_limit_bytes),
        cost_estimate=cost,
    )(x_flat, w_fused, b_fused)

    if s_pad != S:
        out = out[:, :, :S, :]
    return out


class IKeypointPallas:
    """JAX/Pallas port of IKeypoint (training-mode forward)."""

    def __init__(self, nc=80, anchors=(), nkpt=17, ch=(), key=None,
                 compute_dtype=jnp.bfloat16, out_dtype=jnp.float32):
        self.nc = nc
        self.nkpt = nkpt
        self.no_det = nc + 5
        self.no_kpt = 3 * nkpt
        self.no = self.no_det + self.no_kpt
        self.nl = len(anchors)
        self.na = len(anchors[0]) // 2
        self.compute_dtype = compute_dtype
        self.out_dtype = out_dtype
        a = jnp.asarray(anchors, jnp.float32).reshape(self.nl, -1, 2)
        self.anchors = a                                       # registered buffers
        self.anchor_grid = a.reshape(self.nl, 1, -1, 1, 1, 2)

        # Deterministic synthetic parameters (shapes match nn.Conv2d(cin, cout, 1),
        # ImplicitA(cin) ~ N(0, 0.02), ImplicitM(cout) ~ N(1, 0.02)).
        keys = jax.random.split(key, self.nl)
        c_det = self.no_det * self.na
        c_kpt = self.no_kpt * self.na
        self.raw_params = []     # unfused f32 params (for the reference check)
        self.fused_params = []   # (w_fused bf16 (na,cin,no), b_fused f32 (na,1,no))
        for i, cin in enumerate(ch):
            k = jax.random.split(keys[i], 6)
            scale = 1.0 / jnp.sqrt(jnp.float32(cin))
            ia = 0.02 * jax.random.normal(k[0], (1, cin), jnp.float32)
            w_det = scale * jax.random.uniform(k[1], (cin, c_det), jnp.float32, -1.0, 1.0)
            b_det = scale * jax.random.uniform(k[2], (1, c_det), jnp.float32, -1.0, 1.0)
            im = 1.0 + 0.02 * jax.random.normal(k[3], (1, c_det), jnp.float32)
            w_kpt = scale * jax.random.uniform(k[4], (cin, c_kpt), jnp.float32, -1.0, 1.0)
            b_kpt = scale * jax.random.uniform(k[5], (1, c_kpt), jnp.float32, -1.0, 1.0)
            self.raw_params.append((ia, w_det, b_det, im, w_kpt, b_kpt))

            # Fold ImplicitA / ImplicitM + det/kpt concat into one GEMM (done once,
            # in f32, outside the kernel).  Column order stays [det | kpt], so the
            # per-anchor split into consecutive groups of `no` reproduces the
            # PyTorch view(bs, na, no, ny, nx) channel quirk exactly.
            w_f = jnp.concatenate([w_det * im, w_kpt], axis=1)                 # (cin, na*no)
            b_f = jnp.concatenate([(b_det + ia @ w_det) * im, b_kpt], axis=1)  # (1, na*no)
            w_f = w_f.reshape(cin, self.na, self.no).transpose(1, 0, 2)        # (na, cin, no)
            b_f = b_f.reshape(1, self.na, self.no).transpose(1, 0, 2)          # (na, 1, no)
            self.fused_params.append((w_f.astype(self.compute_dtype), b_f))

    def __call__(self, xs):
        """xs: list of nl NCHW arrays (bs, ch[i], ny, nx).
        Returns list of (bs, na, ny, nx, no) arrays (training-mode output)."""
        outs = []
        for i, x in enumerate(xs):
            bs, cin, ny, nx = x.shape
            # Free reshape only (contiguous trailing-dim merge); the NCHW tensor is
            # read directly by the kernel, no transpose / cast HBM roundtrip.
            xf = x.reshape(bs, cin, ny * nx)
            w_f, b_f = self.fused_params[i]
            y = ikeypoint_fused_layer(xf, w_f, b_f, out_dtype=self.out_dtype)
            outs.append(y.reshape(bs, self.na, ny, nx, self.no))  # free reshape
        return outs


def _reference_forward_f32(xs, head):
    """Unfused full-f32 reference of the module math (training branch)."""
    outs = []
    for i, x in enumerate(xs):
        ia, w_det, b_det, im, w_kpt, b_kpt = head.raw_params[i]
        bs, cin, ny, nx = x.shape
        xh = jnp.transpose(x, (0, 2, 3, 1)).astype(jnp.float32)
        det = (jnp.einsum('bhwc,cd->bhwd', xh + ia[0], w_det,
                          precision=jax.lax.Precision.HIGHEST) + b_det[0]) * im[0]
        kpt = jnp.einsum('bhwc,cd->bhwd', xh, w_kpt,
                         precision=jax.lax.Precision.HIGHEST) + b_kpt[0]
        y = jnp.concatenate([det, kpt], -1)
        y = y.reshape(bs, ny, nx, head.na, head.no).transpose(0, 3, 1, 2, 4)
        outs.append(y)
    return outs


def _reference_forward_fused(xs, head):
    """Same fused / bf16-quantized math as the kernel (tight plumbing check)."""
    outs = []
    for i, x in enumerate(xs):
        w_f, b_f = head.fused_params[i]
        bs, cin, ny, nx = x.shape
        xh = (x.reshape(bs, cin, ny * nx)
              .astype(head.compute_dtype).astype(jnp.float32))
        y = jnp.einsum('bcs,acd->basd', xh, w_f.astype(jnp.float32),
                       precision=jax.lax.Precision.HIGHEST) + b_f[None]
        outs.append(y.reshape(bs, head.na, ny, nx, head.no))
    return outs


if __name__ == "__main__":
    key = jax.random.PRNGKey(0)
    k_params, k_x0, k_x1 = jax.random.split(key, 3)

    # Small, module-consistent shapes: 2 detection layers, na=3 anchors each.
    anchors = ((10, 13, 16, 30, 33, 23),
               (30, 61, 62, 45, 59, 119))
    ch = (16, 32)
    bs = 2
    head = IKeypointPallas(nc=80, anchors=anchors, nkpt=17, ch=ch, key=k_params)

    xs = [
        jax.random.normal(k_x0, (bs, ch[0], 16, 16), jnp.float32),  # NCHW, S=256
        jax.random.normal(k_x1, (bs, ch[1], 8, 8), jnp.float32),    # NCHW, S=64
    ]

    outs = head(xs)
    outs = [jax.block_until_ready(o) for o in outs]

    # Sanity: shapes (bs, na, ny, nx, no) and numerics.
    fused_refs = _reference_forward_fused(xs, head)   # identical math -> tight check
    f32_refs = _reference_forward_f32(xs, head)       # original module math -> loose check
    for o, rf, r32, x in zip(outs, fused_refs, f32_refs, xs):
        assert o.shape == (bs, head.na, x.shape[2], x.shape[3], head.no), o.shape
        assert o.dtype == jnp.float32
        assert jnp.allclose(o, rf, atol=1e-3, rtol=1e-3)   # Pallas plumbing vs same fused bf16 math
        assert jnp.allclose(o, r32, atol=3e-2, rtol=3e-2)  # folding + bf16 cast vs full f32 module

    print("KERNEL_OK")
</pallas_src>

<mosaic_0001>
module attributes {stable_mosaic.version = 11 : i64} {
  func.func @_fused_head_kernel(%arg0: i32, %arg1: i32, %arg2: i32, %arg3: memref<1x16x256xf32, #tpu.memory_space<vmem>>, %arg4: memref<3x16x136xbf16, #tpu.memory_space<vmem>>, %arg5: memref<3x1x136xf32, #tpu.memory_space<vmem>>, %arg6: memref<1x1x256x136xf32, #tpu.memory_space<vmem>>) attributes {dimension_semantics = [#tpu.dimension_semantics<parallel>, #tpu.dimension_semantics<parallel>, #tpu.dimension_semantics<arbitrary>], iteration_bounds = array<i64: 2, 1, 3>, scalar_prefetch = 0 : i64, scratch_operands = 0 : i64, tpu.core_type = #tpu.core_type<tc>, window_params = [{transform_indices = @transform_0, window_bounds = array<i64: 1, 16, 256>}, {pipeline_mode = #tpu.pipeline_mode<synchronous>, transform_indices = @transform_1, window_bounds = array<i64: 3, 16, 136>}, {pipeline_mode = #tpu.pipeline_mode<synchronous>, transform_indices = @transform_2, window_bounds = array<i64: 3, 1, 136>}, {transform_indices = @transform_3, window_bounds = array<i64: 1, 1, 256, 136>}]} {
    %c0 = arith.constant 0 : index
    %c0_0 = arith.constant 0 : index
    %c0_1 = arith.constant 0 : index
    %0 = vector.load %arg3[%c0, %c0_0, %c0_1] : memref<1x16x256xf32, #tpu.memory_space<vmem>>, vector<1x16x256xf32>
    %1 = vector.shape_cast %0 : vector<1x16x256xf32> to vector<16x256xf32>
    %2 = arith.truncf %1 : vector<16x256xf32> to vector<16x256xbf16>
    %3 = arith.index_cast %arg2 : i32 to index
    %c0_2 = arith.constant 0 : index
    %c0_3 = arith.constant 0 : index
    %4 = vector.load %arg4[%3, %c0_2, %c0_3] : memref<3x16x136xbf16, #tpu.memory_space<vmem>>, vector<1x16x136xbf16>
    %5 = vector.shape_cast %4 : vector<1x16x136xbf16> to vector<16x136xbf16>
    %cst = arith.constant dense<0.000000e+00> : vector<256x136xf32>
    %6 = tpu.matmul %2, %5, %cst {dimension_numbers = #tpu.dot_dimension_numbers<[0], [0], [1], [1], [0, 1, 1, 1], [], []>} : vector<16x256xbf16>, vector<16x136xbf16>, vector<256x136xf32> -> vector<256x136xf32>
    %7 = arith.index_cast %arg2 : i32 to index
    %c0_4 = arith.constant 0 : index
    %c0_5 = arith.constant 0 : index
    %8 = vector.load %arg5[%7, %c0_4, %c0_5] : memref<3x1x136xf32, #tpu.memory_space<vmem>>, vector<1x1x136xf32>
    %9 = vector.shape_cast %8 : vector<1x1x136xf32> to vector<1x136xf32>
    %10 = vector.broadcast %9 : vector<1x136xf32> to vector<256x136xf32>
    %11 = arith.addf %6, %10 : vector<256x136xf32>
    %c0_6 = arith.constant 0 : index
    %c0_7 = arith.constant 0 : index
    %c0_8 = arith.constant 0 : index
    %c0_9 = arith.constant 0 : index
    %12 = vector.load %arg6[%c0_6, %c0_7, %c0_8, %c0_9] : memref<1x1x256x136xf32, #tpu.memory_space<vmem>>, vector<1x1x256x136xf32>
    %13 = vector.shape_cast %12 : vector<1x1x256x136xf32> to vector<256x136xf32>
    %14 = vector.shape_cast %11 : vector<256x136xf32> to vector<1x1x256x136xf32>
    tpu.vector_store %arg6[%c0_6, %c0_7, %c0_8, %c0_9], %14 {strides = array<i32>} : memref<1x1x256x136xf32, #tpu.memory_space<vmem>>, vector<1x1x256x136xf32>,
    return
  }
  func.func @transform_0(%arg0: i32, %arg1: i32, %arg2: i32) -> (i32, i32, i32) {
    %c0_i32 = arith.constant 0 : i32
    %c0_i32_0 = arith.constant 0 : i32
    return %arg0, %c0_i32, %arg1 : i32, i32, i32
  }
  func.func @transform_1(%arg0: i32, %arg1: i32, %arg2: i32) -> (i32, i32, i32) {
    %c0_i32 = arith.constant 0 : i32
    %c0_i32_0 = arith.constant 0 : i32
    %c0_i32_1 = arith.constant 0 : i32
    %c0_i32_2 = arith.constant 0 : i32
    return %c0_i32, %c0_i32_0, %c0_i32_1 : i32, i32, i32
  }
  func.func @transform_2(%arg0: i32, %arg1: i32, %arg2: i32) -> (i32, i32, i32) {
    %c0_i32 = arith.constant 0 : i32
    %c0_i32_0 = arith.constant 0 : i32
    %c0_i32_1 = arith.constant 0 : i32
    %c0_i32_2 = arith.constant 0 : i32
    return %c0_i32, %c0_i32_0, %c0_i32_1 : i32, i32, i32
  }
  func.func @transform_3(%arg0: i32, %arg1: i32, %arg2: i32) -> (i32, i32, i32, i32) {
    %c0_i32 = arith.constant 0 : i32
    %c0_i32_0 = arith.constant 0 : i32
    return %arg0, %arg2, %arg1, %c0_i32 : i32, i32, i32, i32
  }
}

</mosaic_0001>

<bundles_post_ra>
// kernel: tpu_custom_call.1
= control target key start
LH: loop header
LB: loop body
LE: loop exit
PB: predicated region body
PF: predicated region fallthrough
CT: control target
= control target key end

     0   :  { %s1459_s0 = inlined_call_operand.hbm [shape: f32[2,16,256], index: 0, kind: input, shape index: {}]   ;;  %s1460_s1 = inlined_call_operand.hbm [shape: bf16[3,16,136], index: 1, kind: input, shape index: {}]   ;;  %s1461_s2 = inlined_call_operand.hbm [shape: f32[3,1,136], index: 2, kind: input, shape index: {}]   ;;  %s1462_s3 = inlined_call_operand.vmem [shape: f32[2,3,256,136], index: 3, kind: output, shape index: {}]  }
   0x1   :  { %1463 = sst [smem:[#allocation9_spill]] %s1460_s1 }
   0x2   :  { %8 = vsyncpa [#allocation3], 0 }
   0x3   :  { %10 = vsyncpa [#allocation3 + $0x1], 0 }
   0x4   :  { %11 = vsyncpa [#allocation5], 0  ;;  %s1121_s12 = smov 0   ;;  %s1123_s13 = smov 0  }
   0x5   :  { %s1125_s14 = smov 0   ;;  %s1127_s15 = smov 0  }
   0x6   :  { %s1129_s16 = smov 0   ;;  %s1131_s17 = smov 0  }
   0x7   :  { %s1133_s18 = smov 0   ;;  %s1135_s19 = smov 0  }
   0x8 LB: > { %s765_s20 = sadd.s32 4294967295, %s1091_s19   ;;  %p58_p0 = scmp.ne.s32.totalorder %s1067_s13, %s1063_s12  ;;  %s1091_s19 = sphi %s1135_s19, %s17_s19   ;;  %s1087_s18 = sphi %s1133_s18, %s1476_s18   ;;  %s1083_s17 = sphi %s1131_s17, %s1475_s17   ;;  %s1079_s16 = sphi %s1129_s16, %s1474_s16   ;;  %s1075_s15 = sphi %s1127_s15, %s1473_s15   ;;  %s1071_s14 = sphi %s1125_s14, %s1472_s14   ;;  %s1067_s13 = sphi %s1123_s13, %s1471_s13   ;;  %s1063_s12 = sphi %s1121_s12, %s1470_s12  }
   0x9   : > { %p1161_p1 = scmp.eq.s32.totalorder %s765_s20, 0  ;;  %p767_p2 = scmp.ge.s32.totalorder %s1091_s19, 1 }
   0xa   : > { %p141_p3 = scmp.lt.s32.totalorder %s1091_s19, 7  ;;  %s1466_s1 = sld [smem:[#allocation9_spill]] }
   0xb   : > { %p1169_p4 = por %p1161_p1, %p58_p0  ;;  %s1093_s27 = smov [#allocation4]  }
   0xc   : > { %p1176_p5 = pnand %p767_p2, %p141_p3  ;;  %s154_s28 = sshll.u32 %s1093_s27, 4  ;;  %s155_s28 = int_to_ptr.vmem [resolvable:$true] %s154_s28 }
   0xd   : > { %s166_s4 = sshll.u32 %s1461_s2, 4  ;;  %s1094_s5 = smov 128   ;;  %s167_s4 = int_to_ptr.hbm [resolvable:$true] %s166_s4 }
   0xe   : > { %p842_p6 = pneg %p1176_p5  ;;  %s1095_s6 = smov 8  }
   0xf   : > { %s1096_s7 = smov [#allocation6]   ;;  %s1097_s9 = smov 32  }
  0x10   : > { %s152_s25 = sshll.u32 %s1466_s1, 4  ;;  %p843_p7 = pnand %p842_p6, %p1161_p1  ;;  %s153_s25 = int_to_ptr.hbm [resolvable:$true] %s152_s25 }
  0x11   : > { %s168_s8 = sshll.u32 %s1096_s7, 4  ;;  %s1098_s10 = smov 2   ;;  %s169_s8 = int_to_ptr.vmem [resolvable:$true] %s168_s8 }
  0x12   : > { %845 = dma.hbm_to_vmem [thread:$0]  (!%p843_p7), %s153_s25, 768, %s155_s28, [#allocation5], %s1094_s5, %s1094_s5, %s1095_s6  }
  0x13   : > { %848 = dma.hbm_to_vmem [thread:$0]  (!%p843_p7), %s167_s4, 96, %s169_s8, [#allocation5], %s1097_s9, %s1097_s9, %s1098_s10  }
  0x14   : > { %s29_s11 = sadd.s32 1, %s1083_s17  ;;  %s36_s12 = sadd.s32 1, %s1087_s18 }
  0x15   : > { %p30_p8 = scmp.ge.s32.totalorder %s29_s11, 3  ;;  %s45_s20 = sadd.s32 1, %s1071_s14 }
  0x16   : > { %p52_p9 = scmp.ne.s32.totalorder %s1071_s14, %s1067_s13  ;;  %p53_p10 = scmp.eq.s32.totalorder %s1091_s19, 0 }
  0x17   : > { %s1478_s11 = smov (%p30_p8, %s29_s11), 0  ;;  %s1480_s12 = smov (!%p30_p8, %s36_s12), %s1087_s18 }
  0x18   : > { %p1196_p11 = por %p53_p10, %p52_p9  ;;  %p855_p12 = scmp.lt.s32.totalorder %s1091_s19, 6 }
  0x19   : > { %p38_p13 = scmp.ge.s32.totalorder %s1480_s12, 2  ;;  %s182_s24 = sand.u32 1, %s1071_s14  }
  0x1a   : > { %s771_s25 = sshll.u32 %s182_s24, 5  ;;  %s825_s27 = sshll.u32 %s1087_s18, 5 }
  0x1b   : > { %s1482_s12 = smov (%p38_p13, %s1480_s12), 0  ;;  %s193_s4 = scalar_lea.hbm %s1459_s0, %s825_s27 }
  0x1c   : > { %s40_s28 = ssub.s32 %s1087_s18, %s1482_s12  ;;  %s194_s5 = sshll.u32 %s193_s4, 4  ;;  %s195_s5 = int_to_ptr.hbm [resolvable:$true] %s194_s5 }
  0x1d   : > { %p43_p0 = scmp.eq.s32.totalorder %s40_s28, 0  ;;  %s186_s6 = scalar_lea.vmem [#allocation2], %s771_s25 }
  0x1e   : > { %s196_s7 = sshll.u32 %s186_s6, 4  ;;  %p850_p2 = pnand %p855_p12, %p1196_p11  ;;  %s197_s7 = int_to_ptr.vmem [resolvable:$true] %s196_s7 }
  0x1f   : > { %s1211_s8 = scalar_select %p43_p0, %s1071_s14, %s45_s20  }
  0x20   : > { %s183_s9 = scalar_lea.sflag [#allocation3], %s182_s24  ;;  %s1099_s10 = smov 256  }
  0x21   : > { %s1100_s1 = smov 16   ;;  %208 = sbr.rel (%p1176_p5) target bundleno = 482 (0x1e2), region = 32 }
  0x22   : > { %852 = dma.hbm_to_vmem [thread:$0]  (!%p850_p2), %s195_s5, 512, %s197_s7, %s183_s9, %s1099_s10, %s1099_s10, %s1100_s1  }
  0x23   : > { %s210_s27 = sand.u32 (!%p1176_p5), 1, %s1067_s13  }
  0x24   : > { %s775_s28 = sshll.u32 (!%p1176_p5), %s210_s27, 5  ;;  %s211_s29 = scalar_lea.sflag (!%p1176_p5), [#allocation3], %s210_s27 }
  0x25   : > { %s214_s25 = scalar_lea.vmem (!%p1176_p5), [#allocation2], %s775_s28 }
  0x26   : > { %1054 = dma.done.wait (%p1169_p4), %s211_s29, 512  }
  0x27   : > { %1056 = vsyncadd (%p1169_p4), %s211_s29, 4294966784 }
  0x28   : > { %1058 = dma.done.wait (%p1161_p1), [#allocation5], 864  }
  0x29   : > { %1060 = vsyncadd (%p1161_p1), [#allocation5], 4294966432  ;;  %s826_s1 = sshll.u32 %s1075_s15, 4  ;;  %v274_v0 = vld [vmem:[%s214_s25] sm:$0xff]  ;;  %v275_v1 = vld [vmem:[%s214_s25 + $0x8] sm:$0xff]  ;;  %vm327_vm0 = vcmask 130048  }
  0x2a   : > { %v276_v2 = vld [vmem:[%s214_s25 + $0x10] sm:$0xff]  ;;  %v277_v3 = vld [vmem:[%s214_s25 + $0x18] sm:$0xff]  ;;  %s282_s26 = scalar_lea.vmem [#allocation4], %s826_s1  ;;  %p259_p1 = scmp.lt.s32.totalorder %s1079_s16, 1  ;;  %vm555_vm1 = vcmask 64512  }
  0x2b   : > { %v278_v4 = vpack.c.bf16 %v276_v2, %v274_v0  ;;  %v785_v5 = vld [vmem:[%s282_s26] sm:$0xf]  ;;  %v828_v6 = vld [vmem:[%s282_s26 + $0x4] sm:$0xf0]  ;;  %v279_v7 = vpack.c.bf16 %v277_v3, %v275_v1  ;;  %v827_v9 = vld [vmem:[%s282_s26 + $0x4] sm:$0xf] }
  0x2c   : > { %v786_v8 = vor.u32 %v828_v6, %v785_v5  ;;  %v787_v10 = vld [vmem:[%s282_s26 + $0x8] sm:$0xf0]  ;;  %p261_p3 = scmp.lt.s32.totalorder %s1075_s15, 2  ;;  %s1484_s16 = smov (!%p259_p1, %s1079_s16), 1 }
  0x2d   : > { %v790_v11 = vor.u32 %v827_v9, %v787_v10  ;;  %293 = vxpose.binary.xlu0.c.b16.start.end [1/2] (short) %v279_v7, %v278_v4, 128  ;;  %s782_s22 = sshll.u32 %s1075_s15, 1  ;;  %s831_s20 = smul.u32 192, %s1484_s16 }
  0x2e   : > { %383 = vmatpush.bf16.msra.mxu0 %v786_v8  ;;  %829 = vmatpush.bf16.msra.mxu2 %v786_v8  ;;  %s262_s21 = scalar_select %p261_p3, %s1075_s15, 2 }
  0x2f   : > { %472 = vmatpush.bf16.msra.mxu1 %v790_v11  ;;  %830 = vmatpush.bf16.msra.mxu3 %v790_v11  ;;  %s286_s30 = scalar_lea.vmem [#allocation6], %s782_s22 }
  0x30   : > { %s778_s23 = sshll.u32 %s262_s21, 6  ;;  %v287_v28 = vld [vmem:[%s286_s30] sm:$0x3] }
  0x31   : > { %s269_s24 = sadd.s32 %s831_s20, %s778_s23  ;;  %v1266_v29 = vperm.slane %v287_v28, 0  ;;  %v1268_v30 = vperm.slane %v287_v28, 1 }
  0x32   : > { %s779_s4 = sshll.u32 %s269_s24, 3 }
  0x33   : > { %s1273_s7 = scalar_lea.vmem %s1462_s3, %s779_s4 }
  0xd9   : > { %v301_v12 = vpop.trf.xlu0 }
  0xda   : > { %791 = vmatmul.msk.bf16.vlgmr.msra.gmra.mxu0 %vm327_vm0, %v301_v12  ;;  %807 = vmatmul.msk.bf16.vlgmr.msra.gmra.mxu1 %vm327_vm0, %v301_v12 }
  0xe1   : > { %v302_v13 = vpop.trf.xlu0 }
  0xe2   : > { %799 = vmatmul.msk.bf16.vlgmr.msra.gmra.mxu2 %vm327_vm0, %v302_v13  ;;  %815 = vmatmul.msk.bf16.vlgmr.msra.gmra.mxu3 %vm327_vm0, %v302_v13 }
  0xe9   : > { %v303_v14 = vpop.trf.xlu0 }
  0xea   : > { %792 = vmatmul.msk.bf16.gmra.mxu0 %vm327_vm0, %v303_v14  ;;  %808 = vmatmul.msk.bf16.gmra.mxu1 %vm327_vm0, %v303_v14 }
  0xf1   : > { %v304_v15 = vpop.trf.xlu0 }
  0xf2   : > { %800 = vmatmul.msk.bf16.gmra.mxu2 %vm327_vm0, %v304_v15  ;;  %816 = vmatmul.msk.bf16.gmra.mxu3 %vm327_vm0, %v304_v15 }
  0xf9   : > { %v305_v16 = vpop.trf.xlu0 }
  0xfa   : > { %793 = vmatmul.msk.bf16.gmra.mxu0 %vm327_vm0, %v305_v16  ;;  %809 = vmatmul.msk.bf16.gmra.mxu1 %vm327_vm0, %v305_v16 }
 0x101   : > { %v306_v17 = vpop.trf.xlu0 }
 0x102   : > { %801 = vmatmul.msk.bf16.gmra.mxu2 %vm327_vm0, %v306_v17  ;;  %817 = vmatmul.msk.bf16.gmra.mxu3 %vm327_vm0, %v306_v17 }
 0x109   : > { %v307_v18 = vpop.trf.xlu0 }
 0x10a   : > { %794 = vmatmul.msk.bf16.gmra.mxu0 %vm327_vm0, %v307_v18  ;;  %810 = vmatmul.msk.bf16.gmra.mxu1 %vm327_vm0, %v307_v18 }
 0x111   : > { %v308_v19 = vpop.trf.xlu0 }
 0x112   : > { %802 = vmatmul.msk.bf16.gmra.mxu2 %vm327_vm0, %v308_v19  ;;  %818 = vmatmul.msk.bf16.gmra.mxu3 %vm327_vm0, %v308_v19 }
 0x119   : > { %v309_v20 = vpop.trf.xlu0 }
 0x11a   : > { %795 = vmatmul.msk.bf16.gmra.mxu0 %vm327_vm0, %v309_v20  ;;  %811 = vmatmul.msk.bf16.gmra.mxu1 %vm327_vm0, %v309_v20 }
 0x121   : > { %v310_v21 = vpop.trf.xlu0 }
 0x122   : > { %803 = vmatmul.msk.bf16.gmra.mxu2 %vm327_vm0, %v310_v21  ;;  %819 = vmatmul.msk.bf16.gmra.mxu3 %vm327_vm0, %v310_v21 }
 0x129   : > { %v311_v22 = vpop.trf.xlu0 }
 0x12a   : > { %796 = vmatmul.msk.bf16.gmra.mxu0 %vm327_vm0, %v311_v22  ;;  %812 = vmatmul.msk.bf16.gmra.mxu1 %vm327_vm0, %v311_v22 }
 0x131   : > { %v312_v23 = vpop.trf.xlu0 }
 0x132   : > { %804 = vmatmul.msk.bf16.gmra.mxu2 %vm327_vm0, %v312_v23  ;;  %820 = vmatmul.msk.bf16.gmra.mxu3 %vm327_vm0, %v312_v23 }
 0x139   : > { %v313_v24 = vpop.trf.xlu0 }
 0x13a   : > { %797 = vmatmul.msk.bf16.gmra.mxu0 %vm327_vm0, %v313_v24  ;;  %813 = vmatmul.msk.bf16.gmra.mxu1 %vm327_vm0, %v313_v24 }
 0x141   : > { %v314_v25 = vpop.trf.xlu0 }
 0x142   : > { %805 = vmatmul.msk.bf16.gmra.mxu2 %vm327_vm0, %v314_v25  ;;  %821 = vmatmul.msk.bf16.gmra.mxu3 %vm327_vm0, %v314_v25 }
 0x149   : > { %v315_v26 = vpop.trf.xlu0 }
 0x14a   : > { %798 = vmatmul.msk.bf16.gmra.mxu0 %vm327_vm0, %v315_v26  ;;  %814 = vmatmul.msk.bf16.gmra.mxu1 %vm327_vm0, %v315_v26 }
 0x151   : > { %v316_v27 = vpop.trf.xlu0 }
 0x152   : > { %806 = vmatmul.msk.bf16.gmra.mxu2 %vm327_vm0, %v316_v27  ;;  %822 = vmatmul.msk.bf16.gmra.mxu3 %vm327_vm0, %v316_v27 }
 0x157   : > { %v385_v31 = vpop.f32.mrf.mxu0  ;;  %v474_v32 = vpop.f32.mrf.mxu1 }
 0x158   : > { %v386_v33 = vadd.f32 %v385_v31, %v1266_v29  ;;  %v475_v34 = vadd.f32 %v474_v32, %v1268_v30 }
 0x15a   : > { %554 = vst [vmem:[%s1273_s7] sm:$0xff] %v386_v33 }
 0x15b   : > { %556 = vst.msk [vmem:[%s1273_s7 + $0x8] sm:$0xff] %vm555_vm1, %v475_v34 }
 0x15f   : > { %v387_v35 = vpop.f32.mrf.mxu0  ;;  %v476_v36 = vpop.f32.mrf.mxu1 }
 0x160   : > { %v388_v37 = vadd.f32 %v387_v35, %v1266_v29  ;;  %v477_v38 = vadd.f32 %v476_v36, %v1268_v30 }
 0x162   : > { %557 = vst [vmem:[%s1273_s7 + $0x10] sm:$0xff] %v388_v37 }
 0x163   : > { %558 = vst.msk [vmem:[%s1273_s7 + $0x18] sm:$0xff] %vm555_vm1, %v477_v38 }
 0x165   : > { %v425_v39 = vpop.f32.mrf.mxu2  ;;  %v514_v40 = vpop.f32.mrf.mxu3 }
 0x166   : > { %v426_v41 = vadd.f32 %v425_v39, %v1266_v29  ;;  %v515_v42 = vadd.f32 %v514_v40, %v1268_v30 }
 0x167   : > { %v390_v43 = vpop.f32.mrf.mxu0  ;;  %v479_v44 = vpop.f32.mrf.mxu1 }
 0x168   : > { %587 = vst [vmem:[%s1273_s7 + $0x100] sm:$0xff] %v426_v41  ;;  %v391_v45 = vadd.f32 %v390_v43, %v1266_v29  ;;  %v480_v46 = vadd.f32 %v479_v44, %v1268_v30 }
 0x169   : > { %588 = vst.msk [vmem:[%s1273_s7 + $0x108] sm:$0xff] %vm555_vm1, %v515_v42 }
 0x16a   : > { %559 = vst [vmem:[%s1273_s7 + $0x20] sm:$0xff] %v391_v45 }
 0x16b   : > { %560 = vst.msk [vmem:[%s1273_s7 + $0x28] sm:$0xff] %vm555_vm1, %v480_v46 }
 0x16d   : > { %v427_v47 = vpop.f32.mrf.mxu2  ;;  %v516_v48 = vpop.f32.mrf.mxu3 }
 0x16e   : > { %v428_v49 = vadd.f32 %v427_v47, %v1266_v29  ;;  %v517_v50 = vadd.f32 %v516_v48, %v1268_v30 }
 0x16f   : > { %v392_v51 = vpop.f32.mrf.mxu0  ;;  %v481_v52 = vpop.f32.mrf.mxu1 }
 0x170   : > { %589 = vst [vmem:[%s1273_s7 + $0x110] sm:$0xff] %v428_v49  ;;  %v393_v53 = vadd.f32 %v392_v51, %v1266_v29  ;;  %v482_v54 = vadd.f32 %v481_v52, %v1268_v30 }
 0x171   : > { %590 = vst.msk [vmem:[%s1273_s7 + $0x118] sm:$0xff] %vm555_vm1, %v517_v50 }
 0x172   : > { %561 = vst [vmem:[%s1273_s7 + $0x30] sm:$0xff] %v393_v53 }
 0x173   : > { %562 = vst.msk [vmem:[%s1273_s7 + $0x38] sm:$0xff] %vm555_vm1, %v482_v54 }
 0x175   : > { %v430_v55 = vpop.f32.mrf.mxu2  ;;  %v519_v56 = vpop.f32.mrf.mxu3 }
 0x176   : > { %v431_v57 = vadd.f32 %v430_v55, %v1266_v29  ;;  %v520_v58 = vadd.f32 %v519_v56, %v1268_v30 }
 0x177   : > { %v395_v59 = vpop.f32.mrf.mxu0  ;;  %v484_v60 = vpop.f32.mrf.mxu1 }
 0x178   : > { %591 = vst [vmem:[%s1273_s7 + $0x120] sm:$0xff] %v431_v57  ;;  %v396_v61 = vadd.f32 %v395_v59, %v1266_v29  ;;  %v485_v62 = vadd.f32 %v484_v60, %v1268_v30 }
 0x179   : > { %592 = vst.msk [vmem:[%s1273_s7 + $0x128] sm:$0xff] %vm555_vm1, %v520_v58 }
 0x17a   : > { %563 = vst [vmem:[%s1273_s7 + $0x40] sm:$0xff] %v396_v61 }
 0x17b   : > { %564 = vst.msk [vmem:[%s1273_s7 + $0x48] sm:$0xff] %vm555_vm1, %v485_v62 }
 0x17d   : > { %v432_v63 = vpop.f32.mrf.mxu2  ;;  %v521_v0 = vpop.f32.mrf.mxu3 }
 0x17e   : > { %v433_v1 = vadd.f32 %v432_v63, %v1266_v29  ;;  %v522_v2 = vadd.f32 %v521_v0, %v1268_v30 }
 0x17f   : > { %v397_v3 = vpop.f32.mrf.mxu0  ;;  %v486_v4 = vpop.f32.mrf.mxu1 }
 0x180   : > { %593 = vst [vmem:[%s1273_s7 + $0x130] sm:$0xff] %v433_v1  ;;  %v398_v5 = vadd.f32 %v397_v3, %v1266_v29  ;;  %v487_v6 = vadd.f32 %v486_v4, %v1268_v30 }
 0x181   : > { %594 = vst.msk [vmem:[%s1273_s7 + $0x138] sm:$0xff] %vm555_vm1, %v522_v2 }
 0x182   : > { %565 = vst [vmem:[%s1273_s7 + $0x50] sm:$0xff] %v398_v5 }
 0x183   : > { %566 = vst.msk [vmem:[%s1273_s7 + $0x58] sm:$0xff] %vm555_vm1, %v487_v6 }
 0x185   : > { %v435_v7 = vpop.f32.mrf.mxu2  ;;  %v524_v8 = vpop.f32.mrf.mxu3 }
 0x186   : > { %v436_v9 = vadd.f32 %v435_v7, %v1266_v29  ;;  %v525_v10 = vadd.f32 %v524_v8, %v1268_v30 }
 0x187   : > { %v400_v11 = vpop.f32.mrf.mxu0  ;;  %v489_v12 = vpop.f32.mrf.mxu1 }
 0x188   : > { %595 = vst [vmem:[%s1273_s7 + $0x140] sm:$0xff] %v436_v9  ;;  %v401_v13 = vadd.f32 %v400_v11, %v1266_v29  ;;  %v490_v14 = vadd.f32 %v489_v12, %v1268_v30 }
 0x189   : > { %596 = vst.msk [vmem:[%s1273_s7 + $0x148] sm:$0xff] %vm555_vm1, %v525_v10 }
 0x18a   : > { %567 = vst [vmem:[%s1273_s7 + $0x60] sm:$0xff] %v401_v13 }
 0x18b   : > { %568 = vst.msk [vmem:[%s1273_s7 + $0x68] sm:$0xff] %vm555_vm1, %v490_v14 }
 0x18d   : > { %v437_v15 = vpop.f32.mrf.mxu2  ;;  %v526_v16 = vpop.f32.mrf.mxu3 }
 0x18e   : > { %v438_v17 = vadd.f32 %v437_v15, %v1266_v29  ;;  %v527_v18 = vadd.f32 %v526_v16, %v1268_v30 }
 0x18f   : > { %v402_v19 = vpop.f32.mrf.mxu0  ;;  %v491_v20 = vpop.f32.mrf.mxu1 }
 0x190   : > { %597 = vst [vmem:[%s1273_s7 + $0x150] sm:$0xff] %v438_v17  ;;  %v403_v21 = vadd.f32 %v402_v19, %v1266_v29  ;;  %v492_v22 = vadd.f32 %v491_v20, %v1268_v30 }
 0x191   : > { %598 = vst.msk [vmem:[%s1273_s7 + $0x158] sm:$0xff] %vm555_vm1, %v527_v18 }
 0x192   : > { %569 = vst [vmem:[%s1273_s7 + $0x70] sm:$0xff] %v403_v21 }
 0x193   : > { %570 = vst.msk [vmem:[%s1273_s7 + $0x78] sm:$0xff] %vm555_vm1, %v492_v22 }
 0x195   : > { %v440_v23 = vpop.f32.mrf.mxu2  ;;  %v529_v24 = vpop.f32.mrf.mxu3 }
 0x196   : > { %v441_v25 = vadd.f32 %v440_v23, %v1266_v29  ;;  %v530_v26 = vadd.f32 %v529_v24, %v1268_v30 }
 0x197   : > { %v405_v27 = vpop.f32.mrf.mxu0  ;;  %v494_v28 = vpop.f32.mrf.mxu1 }
 0x198   : > { %599 = vst [vmem:[%s1273_s7 + $0x160] sm:$0xff] %v441_v25  ;;  %v406_v31 = vadd.f32 %v405_v27, %v1266_v29  ;;  %v495_v32 = vadd.f32 %v494_v28, %v1268_v30 }
 0x199   : > { %600 = vst.msk [vmem:[%s1273_s7 + $0x168] sm:$0xff] %vm555_vm1, %v530_v26 }
 0x19a   : > { %571 = vst [vmem:[%s1273_s7 + $0x80] sm:$0xff] %v406_v31 }
 0x19b   : > { %572 = vst.msk [vmem:[%s1273_s7 + $0x88] sm:$0xff] %vm555_vm1, %v495_v32 }
 0x19d   : > { %v442_v33 = vpop.f32.mrf.mxu2  ;;  %v531_v34 = vpop.f32.mrf.mxu3 }
 0x19e   : > { %v443_v35 = vadd.f32 %v442_v33, %v1266_v29  ;;  %v532_v36 = vadd.f32 %v531_v34, %v1268_v30 }
 0x19f   : > { %v407_v37 = vpop.f32.mrf.mxu0  ;;  %v496_v38 = vpop.f32.mrf.mxu1 }
 0x1a0   : > { %601 = vst [vmem:[%s1273_s7 + $0x170] sm:$0xff] %v443_v35  ;;  %v408_v39 = vadd.f32 %v407_v37, %v1266_v29  ;;  %v497_v40 = vadd.f32 %v496_v38, %v1268_v30 }
 0x1a1   : > { %602 = vst.msk [vmem:[%s1273_s7 + $0x178] sm:$0xff] %vm555_vm1, %v532_v36 }
 0x1a2   : > { %573 = vst [vmem:[%s1273_s7 + $0x90] sm:$0xff] %v408_v39 }
 0x1a3   : > { %574 = vst.msk [vmem:[%s1273_s7 + $0x98] sm:$0xff] %vm555_vm1, %v497_v40 }
 0x1a5   : > { %v445_v41 = vpop.f32.mrf.mxu2  ;;  %v534_v42 = vpop.f32.mrf.mxu3 }
 0x1a6   : > { %v446_v43 = vadd.f32 %v445_v41, %v1266_v29  ;;  %v535_v44 = vadd.f32 %v534_v42, %v1268_v30 }
 0x1a7   : > { %v410_v45 = vpop.f32.mrf.mxu0  ;;  %v499_v46 = vpop.f32.mrf.mxu1 }
 0x1a8   : > { %603 = vst [vmem:[%s1273_s7 + $0x180] sm:$0xff] %v446_v43  ;;  %v411_v47 = vadd.f32 %v410_v45, %v1266_v29  ;;  %v500_v48 = vadd.f32 %v499_v46, %v1268_v30 }
 0x1a9   : > { %604 = vst.msk [vmem:[%s1273_s7 + $0x188] sm:$0xff] %vm555_vm1, %v535_v44 }
 0x1aa   : > { %575 = vst [vmem:[%s1273_s7 + $0xa0] sm:$0xff] %v411_v47 }
 0x1ab   : > { %576 = vst.msk [vmem:[%s1273_s7 + $0xa8] sm:$0xff] %vm555_vm1, %v500_v48 }
 0x1ad   : > { %v447_v49 = vpop.f32.mrf.mxu2  ;;  %v536_v50 = vpop.f32.mrf.mxu3 }
 0x1ae   : > { %v448_v51 = vadd.f32 %v447_v49, %v1266_v29  ;;  %v537_v52 = vadd.f32 %v536_v50, %v1268_v30 }
 0x1af   : > { %v412_v53 = vpop.f32.mrf.mxu0  ;;  %v501_v54 = vpop.f32.mrf.mxu1 }
 0x1b0   : > { %605 = vst [vmem:[%s1273_s7 + $0x190] sm:$0xff] %v448_v51  ;;  %v413_v55 = vadd.f32 %v412_v53, %v1266_v29  ;;  %v502_v56 = vadd.f32 %v501_v54, %v1268_v30 }
 0x1b1   : > { %606 = vst.msk [vmem:[%s1273_s7 + $0x198] sm:$0xff] %vm555_vm1, %v537_v52 }
 0x1b2   : > { %577 = vst [vmem:[%s1273_s7 + $0xb0] sm:$0xff] %v413_v55 }
 0x1b3   : > { %578 = vst.msk [vmem:[%s1273_s7 + $0xb8] sm:$0xff] %vm555_vm1, %v502_v56 }
 0x1b5   : > { %v450_v57 = vpop.f32.mrf.mxu2  ;;  %v539_v58 = vpop.f32.mrf.mxu3 }
 0x1b6   : > { %v451_v59 = vadd.f32 %v450_v57, %v1266_v29  ;;  %v540_v60 = vadd.f32 %v539_v58, %v1268_v30 }
 0x1b7   : > { %v415_v61 = vpop.f32.mrf.mxu0  ;;  %v504_v62 = vpop.f32.mrf.mxu1 }
 0x1b8   : > { %607 = vst [vmem:[%s1273_s7 + $0x1a0] sm:$0xff] %v451_v59  ;;  %v416_v63 = vadd.f32 %v415_v61, %v1266_v29  ;;  %v505_v0 = vadd.f32 %v504_v62, %v1268_v30 }
 0x1b9   : > { %608 = vst.msk [vmem:[%s1273_s7 + $0x1a8] sm:$0xff] %vm555_vm1, %v540_v60 }
 0x1ba   : > { %579 = vst [vmem:[%s1273_s7 + $0xc0] sm:$0xff] %v416_v63 }
 0x1bb   : > { %580 = vst.msk [vmem:[%s1273_s7 + $0xc8] sm:$0xff] %vm555_vm1, %v505_v0 }
 0x1bd   : > { %v452_v1 = vpop.f32.mrf.mxu2  ;;  %v541_v2 = vpop.f32.mrf.mxu3 }
 0x1be   : > { %v453_v3 = vadd.f32 %v452_v1, %v1266_v29  ;;  %v542_v4 = vadd.f32 %v541_v2, %v1268_v30 }
 0x1bf   : > { %v417_v5 = vpop.f32.mrf.mxu0  ;;  %v506_v6 = vpop.f32.mrf.mxu1 }
 0x1c0   : > { %609 = vst [vmem:[%s1273_s7 + $0x1b0] sm:$0xff] %v453_v3  ;;  %v418_v7 = vadd.f32 %v417_v5, %v1266_v29  ;;  %v507_v8 = vadd.f32 %v506_v6, %v1268_v30 }
 0x1c1   : > { %610 = vst.msk [vmem:[%s1273_s7 + $0x1b8] sm:$0xff] %vm555_vm1, %v542_v4 }
 0x1c2   : > { %581 = vst [vmem:[%s1273_s7 + $0xd0] sm:$0xff] %v418_v7 }
 0x1c3   : > { %582 = vst.msk [vmem:[%s1273_s7 + $0xd8] sm:$0xff] %vm555_vm1, %v507_v8 }
 0x1c5   : > { %v455_v9 = vpop.f32.mrf.mxu2  ;;  %v544_v10 = vpop.f32.mrf.mxu3 }
 0x1c6   : > { %v456_v11 = vadd.f32 %v455_v9, %v1266_v29  ;;  %v545_v12 = vadd.f32 %v544_v10, %v1268_v30 }
 0x1c7   : > { %v420_v13 = vpop.f32.mrf.mxu0  ;;  %v509_v14 = vpop.f32.mrf.mxu1 }
 0x1c8   : > { %611 = vst [vmem:[%s1273_s7 + $0x1c0] sm:$0xff] %v456_v11  ;;  %v421_v15 = vadd.f32 %v420_v13, %v1266_v29  ;;  %v510_v16 = vadd.f32 %v509_v14, %v1268_v30 }
 0x1c9   : > { %612 = vst.msk [vmem:[%s1273_s7 + $0x1c8] sm:$0xff] %vm555_vm1, %v545_v12 }
 0x1ca   : > { %583 = vst [vmem:[%s1273_s7 + $0xe0] sm:$0xff] %v421_v15 }
 0x1cb   : > { %584 = vst.msk [vmem:[%s1273_s7 + $0xe8] sm:$0xff] %vm555_vm1, %v510_v16 }
 0x1cd   : > { %v457_v17 = vpop.f32.mrf.mxu2  ;;  %v546_v18 = vpop.f32.mrf.mxu3 }
 0x1ce   : > { %v458_v19 = vadd.f32 %v457_v17, %v1266_v29  ;;  %v547_v20 = vadd.f32 %v546_v18, %v1268_v30 }
 0x1cf   : > { %v422_v21 = vpop.f32.mrf.mxu0  ;;  %v511_v22 = vpop.f32.mrf.mxu1 }
 0x1d0   : > { %613 = vst [vmem:[%s1273_s7 + $0x1d0] sm:$0xff] %v458_v19  ;;  %v423_v23 = vadd.f32 %v422_v21, %v1266_v29  ;;  %v512_v24 = vadd.f32 %v511_v22, %v1268_v30 }
 0x1d1   : > { %614 = vst.msk [vmem:[%s1273_s7 + $0x1d8] sm:$0xff] %vm555_vm1, %v547_v20 }
 0x1d2   : > { %585 = vst [vmem:[%s1273_s7 + $0xf0] sm:$0xff] %v423_v23 }
 0x1d3   : > { %586 = vst.msk [vmem:[%s1273_s7 + $0xf8] sm:$0xff] %vm555_vm1, %v512_v24 }
 0x1d5   : > { %v460_v25 = vpop.f32.mrf.mxu2  ;;  %v549_v26 = vpop.f32.mrf.mxu3 }
 0x1d6   : > { %v461_v27 = vadd.f32 %v460_v25, %v1266_v29  ;;  %v550_v28 = vadd.f32 %v549_v26, %v1268_v30 }
 0x1d8   : > { %615 = vst [vmem:[%s1273_s7 + $0x1e0] sm:$0xff] %v461_v27 }
 0x1d9   : > { %616 = vst.msk [vmem:[%s1273_s7 + $0x1e8] sm:$0xff] %vm555_vm1, %v550_v28 }
 0x1dd   : > { %v462_v31 = vpop.f32.mrf.mxu2  ;;  %v551_v32 = vpop.f32.mrf.mxu3 }
 0x1de   : > { %v463_v33 = vadd.f32 %v462_v31, %v1266_v29  ;;  %v552_v34 = vadd.f32 %v551_v32, %v1268_v30 }
 0x1e0   : > { %617 = vst [vmem:[%s1273_s7 + $0x1f0] sm:$0xff] %v463_v33 }
 0x1e1   : > { %618 = vst.msk [vmem:[%s1273_s7 + $0x1f8] sm:$0xff] %vm555_vm1, %v552_v34 }
 0x1e2 PF: > { %s17_s19 = sadd.s32 1, %s1091_s19   ;;  %s1469_s9 = smov %s1482_s12 }
 0x1e3   : > { %p14_p4 = scmp.ge.s32.totalorder %s17_s19, 8   ;;  %s1470_s12 = smov %s1067_s13 }
 0x1e4   : > { %s1471_s13 = smov %s1071_s14  ;;  %s1472_s14 = smov %s1211_s8 }
 0x1e5   : > { %s1473_s15 = smov %s1083_s17  ;;  %s1474_s16 = smov %s1087_s18 }
 0x1e6   : > { %s1475_s17 = smov %s1478_s11  ;;  %s1476_s18 = smov %s1469_s9 }
 0x1e7   :  { %16 = sbr.rel (!%p14_p4) target bundleno = 8 (0x8), region = 82 }
 0x1ec   :  { %659 = vsyncpa [#allocation3], 1 }
 0x1ed   :  { %661 = vsyncpa [#allocation3 + $0x1], 1 }
 0x1ee   :  { %662 = vsyncpa [#allocation5], 1 }

</bundles_post_ra>
